<compile_context>
chip_gen: v7x
topology: tpu7x:2x2x1
jax: 0.10.0
libtpu: 0.0.40
codegen_flags: <defaults>
</compile_context>

<pallas_src>
import functools
import math

import jax
import jax.numpy as jnp
from jax import lax
from jax.experimental import pallas as pl
from jax.experimental.pallas import tpu as pltpu

EPS = 1e-5  # RMSNorm epsilon


def _rmsnorm(v, w):
    ms = jnp.mean(v * v, axis=-1, keepdims=True)
    return v * lax.rsqrt(ms + EPS) * w


def transformer_block_kernel(x_ref, ln1_ref, ln2_ref, wq_ref, wkv_ref, wo_ref,
                             w13_ref, w2_ref, o_ref, k_cache, v_cache,
                             *, num_heads, seq_tile):
    S, D = x_ref.shape[1], x_ref.shape[2]
    H = num_heads
    dh = D // H
    dff = w2_ref.shape[0]
    tS = seq_tile
    bf16 = jnp.bfloat16
    f32 = jnp.float32
    j = pl.program_id(1)

    # ---------- K/V cache: computed ONCE per batch row, reused by every q tile ----------
    @pl.when(j == 0)
    def _():
        xf = x_ref[0].astype(f32)                                  # (S, D)
        x1f = _rmsnorm(xf, ln1_ref[0])
        kv = jnp.dot(x1f.astype(bf16), wkv_ref[...],
                     preferred_element_type=f32)                   # (S, 2D), one fused matmul
        for h in range(H):                                         # head-major bf16 cache
            k_cache[h] = kv[:, h * dh:(h + 1) * dh].astype(bf16)
            v_cache[h] = kv[:, D + h * dh:D + (h + 1) * dh].astype(bf16)

    # ---------- query tile: RMSNorm + Q projection (1/sqrt(dh) folded into Wq) ----------
    q_start = pl.multiple_of(j * tS, tS)
    x_t = x_ref[0, pl.ds(q_start, tS), :].astype(f32)              # (tS, D)
    x1t = _rmsnorm(x_t, ln1_ref[0])
    q2 = jnp.dot(x1t.astype(bf16), wq_ref[...],
                 preferred_element_type=f32)                       # (tS, D), already scaled
    q3b = jnp.stack([q2[:, h * dh:(h + 1) * dh] for h in range(H)],
                    axis=0).astype(bf16)                           # (H, tS, dh)

    # ---------- flash-style causal attention over KV tiles t = 0..j ----------
    # Only the diagonal tile needs intra-tile masking; earlier tiles are fully
    # visible; later (fully-masked) tiles are skipped entirely by the loop bound.
    r = lax.broadcasted_iota(jnp.int32, (tS, tS), 0)
    c = lax.broadcasted_iota(jnp.int32, (tS, tS), 1)
    diag_mask = jnp.where(r >= c, 0.0, -1e30).astype(f32)          # (tS, tS)

    def kv_step(t, carry):
        m, l, acc = carry
        k_start = pl.multiple_of(t * tS, tS)
        kt = k_cache[:, pl.ds(k_start, tS), :]                     # (H, tS, dh) bf16
        vt = v_cache[:, pl.ds(k_start, tS), :]
        s = jnp.einsum('hqd,hkd->hqk', q3b, kt,
                       preferred_element_type=f32)                 # (H, tS, tS)
        on_diag = jnp.where(t == j, 1.0, 0.0).astype(f32)          # scalar gate
        s = s + (on_diag * diag_mask)[None, :, :]
        m_new = jnp.maximum(m, jnp.max(s, axis=-1, keepdims=True))
        alpha = jnp.exp(m - m_new)
        p = jnp.exp(s - m_new)                                     # unnormalized probs
        l = alpha * l + jnp.sum(p, axis=-1, keepdims=True)
        acc = alpha * acc + jnp.einsum('hqk,hkd->hqd', p.astype(bf16), vt,
                                       preferred_element_type=f32)
        return m_new, l, acc

    m0 = jnp.full((H, tS, 1), -1e30, f32)
    l0 = jnp.zeros((H, tS, 1), f32)
    a0 = jnp.zeros((H, tS, dh), f32)
    _, l, acc = lax.fori_loop(0, j + 1, kv_step, (m0, l0, a0))

    # normalize AFTER P@V: one (H,tS,dh) multiply instead of scaling (H,tS,S) probs
    o3 = (acc * pl.reciprocal(l, approx=True)).astype(bf16)        # (H, tS, dh)
    o2 = jnp.concatenate([o3[h] for h in range(H)], axis=-1)       # (tS, D) lane concat
    attn = jnp.dot(o2, wo_ref[...], preferred_element_type=f32)    # single D-wide contraction

    x2 = attn + x_t                                                # residual 1

    # ---------- RMSNorm 2 + SwiGLU FFN ----------
    x3 = _rmsnorm(x2, ln2_ref[0])
    h13 = jnp.dot(x3.astype(bf16), w13_ref[...],
                  preferred_element_type=f32)                      # (tS, 2*dff), one matmul
    h1, h3v = h13[:, :dff], h13[:, dff:]
    g = h1 * jax.nn.sigmoid(h1) * h3v                              # SiLU(w1 x) * (w3 x), f32
    ffn = jnp.dot(g.astype(bf16), w2_ref[...],
                  preferred_element_type=f32)                      # (tS, D)

    o_ref[0] = (ffn + x2).astype(o_ref.dtype)                      # residual 2, lane-dense slab


def _vmem_limit_bytes(S, D, H, dh, dff, tS):
    bf, f = 2, 4
    pad = lambda n, m: ((n + m - 1) // m) * m
    # weights (double-buffered by the auto-pipeline even though static)
    w = (D * D + D * 2 * D + D * D + D * 2 * dff + dff * D) * bf + 2 * D * f
    x_in = S * D * f
    out = tS * D * f
    cache = 2 * H * pad(S, 16) * pad(dh, 128) * bf
    transient = (2 * H * tS * tS * f                         # s, p
                 + 3 * H * tS * pad(dh, 128) * f             # q3, acc, PV temp
                 + S * 2 * D * f + S * D * f                 # kv + x1f at j == 0
                 + tS * 2 * dff * f + tS * dff * f            # h13, g
                 + 4 * tS * D * f)
    est = 2 * (w + x_in + out) + cache + transient
    try:
        cap = int(pltpu.get_tpu_info().vmem_capacity_bytes)
    except Exception:
        cap = 64 * 2 ** 20                                   # conservative (v7x) fallback
    return int(min(int(0.875 * cap), max(32 * 2 ** 20, int(1.15 * est))))


def prepack_params(params, num_heads):
    """One-time weight prepack: fused/bf16 weights, 1/sqrt(dh) folded into Wq."""
    D = params["wq_t"].shape[0]
    dh = D // num_heads
    scale = 1.0 / math.sqrt(dh)
    bf16 = jnp.bfloat16
    f32 = jnp.float32
    return {
        "ln1": params["ln1"].astype(f32),
        "ln2": params["ln2"].astype(f32),
        "wq": (params["wq_t"] * scale).astype(bf16),                         # (D, D)
        "wkv": jnp.concatenate([params["wk_t"], params["wv_t"]], axis=1).astype(bf16),   # (D, 2D)
        "wo": params["wo_t"].astype(bf16),                                   # (D, D)
        "w13": jnp.concatenate([params["w1_t"], params["w3_t"]], axis=1).astype(bf16),   # (D, 2*dff)
        "w2": params["w2_t"].astype(bf16),                                   # (dff, D)
    }


def transformer_block(x, packed, num_heads, *, seq_tile=None):
    B, S, D = x.shape
    assert D % num_heads == 0
    dh = D // num_heads
    dff = packed["w2"].shape[0]

    if seq_tile is None:
        if S <= 256:
            seq_tile = S
        elif S % 256 == 0:
            seq_tile = 256
        elif S % 128 == 0:
            seq_tile = 128
        else:
            seq_tile = S
    assert S % seq_tile == 0 and (seq_tile == S or seq_tile % 8 == 0)
    n_tiles = S // seq_tile

    def rep(shape):
        n = len(shape)
        return pl.BlockSpec(shape, lambda b, j: (0,) * n)        # replicated weight block

    kernel = functools.partial(transformer_block_kernel,
                               num_heads=num_heads, seq_tile=seq_tile)

    return pl.pallas_call(
        kernel,
        out_shape=jax.ShapeDtypeStruct((B, S, D), x.dtype),
        grid=(B, n_tiles),
        in_specs=[
            pl.BlockSpec((1, S, D), lambda b, j: (b, 0, 0)),     # x: full row (K/V at j==0 + residual tile)
            rep((1, D)), rep((1, D)),                            # ln1, ln2
            rep((D, D)),                                         # Wq^T (scale folded in)
            rep((D, 2 * D)),                                     # [Wk^T | Wv^T]
            rep((D, D)),                                         # Wo^T
            rep((D, 2 * dff)),                                   # [W1^T | W3^T]
            rep((dff, D)),                                       # W2^T
        ],
        out_specs=pl.BlockSpec((1, seq_tile, D), lambda b, j: (b, j, 0)),
        scratch_shapes=[
            pltpu.VMEM((num_heads, S, dh), jnp.bfloat16),        # K cache (head-major)
            pltpu.VMEM((num_heads, S, dh), jnp.bfloat16),        # V cache (head-major)
        ],
        compiler_params=pltpu.CompilerParams(
            dimension_semantics=("parallel", "arbitrary"),       # scratch carries across j
            vmem_limit_bytes=_vmem_limit_bytes(S, D, num_heads, dh, dff, seq_tile)),
    )(x, packed["ln1"], packed["ln2"], packed["wq"], packed["wkv"],
      packed["wo"], packed["w13"], packed["w2"])


def init_params(key, d_model, d_ff):
    ks = jax.random.split(key, 7)
    scale = 0.02
    f32 = jnp.float32
    return {
        # RMSNorm weights initialized to ones (as in nn.RMSNorm)
        "ln1": jnp.ones((1, d_model), f32),
        "ln2": jnp.ones((1, d_model), f32),
        # Linear weights stored pre-transposed: (in, out) so y = x @ W_t == x @ W.T
        "wq_t": scale * jax.random.normal(ks[0], (d_model, d_model), f32),
        "wk_t": scale * jax.random.normal(ks[1], (d_model, d_model), f32),
        "wv_t": scale * jax.random.normal(ks[2], (d_model, d_model), f32),
        "wo_t": scale * jax.random.normal(ks[3], (d_model, d_model), f32),
        "w1_t": scale * jax.random.normal(ks[4], (d_model, d_ff), f32),
        "w3_t": scale * jax.random.normal(ks[5], (d_model, d_ff), f32),
        "w2_t": scale * jax.random.normal(ks[6], (d_ff, d_model), f32),
    }


def transformer_block_reference(x, params, num_heads):
    # Pure-JAX f32 reference of the PyTorch module forward.
    B, S, D = x.shape
    dh = D // num_heads

    def rms(v, w):
        return v * lax.rsqrt(jnp.mean(v * v, axis=-1, keepdims=True) + EPS) * w

    x1 = rms(x, params["ln1"][0])
    q = x1 @ params["wq_t"]
    k = x1 @ params["wk_t"]
    v = x1 @ params["wv_t"]
    qh = q.reshape(B, S, num_heads, dh).transpose(0, 2, 1, 3)
    kh = k.reshape(B, S, num_heads, dh).transpose(0, 2, 1, 3)
    vh = v.reshape(B, S, num_heads, dh).transpose(0, 2, 1, 3)
    s = jnp.einsum('bhqd,bhkd->bhqk', qh, kh) / math.sqrt(dh)
    mask = jnp.tril(jnp.ones((S, S), bool))
    s = jnp.where(mask, s, -jnp.inf)
    p = jax.nn.softmax(s, axis=-1)
    o = jnp.einsum('bhqk,bhkd->bhqd', p, vh).transpose(0, 2, 1, 3).reshape(B, S, D)
    attn = o @ params["wo_t"]
    x2 = attn + x
    x3 = rms(x2, params["ln2"][0])
    h1 = x3 @ params["w1_t"]
    h3 = x3 @ params["w3_t"]
    ffn = (h1 * jax.nn.sigmoid(h1) * h3) @ params["w2_t"]
    return ffn + x2


if __name__ == "__main__":
    B, S, D, H, DFF = 2, 8, 32, 4, 64
    key = jax.random.PRNGKey(0)
    k_x, k_p = jax.random.split(key)
    x = jax.random.normal(k_x, (B, S, D), jnp.float32)
    params = init_params(k_p, D, DFF)
    packed = prepack_params(params, H)        # one-time prepack, outside the per-call path

    out = transformer_block(x, packed, num_heads=H)
    out = jax.block_until_ready(out)

    assert out.shape == (B, S, D) and out.dtype == jnp.float32
    assert bool(jnp.all(jnp.isfinite(out)))

    ref = transformer_block_reference(x, params, H)
    max_err = float(jnp.max(jnp.abs(out - ref)))
    assert max_err < 5e-2, f"mismatch vs f32 reference: {max_err}"

    print("KERNEL_OK")
</pallas_src>

<mosaic_0001>
module attributes {stable_mosaic.version = 11 : i64} {
  func.func @transformer_block_kernel(%arg0: i32, %arg1: i32, %arg2: memref<1x8x32xf32, #tpu.memory_space<vmem>>, %arg3: memref<1x32xf32, #tpu.memory_space<vmem>>, %arg4: memref<1x32xf32, #tpu.memory_space<vmem>>, %arg5: memref<32x32xbf16, #tpu.memory_space<vmem>>, %arg6: memref<32x64xbf16, #tpu.memory_space<vmem>>, %arg7: memref<32x32xbf16, #tpu.memory_space<vmem>>, %arg8: memref<32x128xbf16, #tpu.memory_space<vmem>>, %arg9: memref<64x32xbf16, #tpu.memory_space<vmem>>, %arg10: memref<1x8x32xf32, #tpu.memory_space<vmem>>, %arg11: memref<4x8x8xbf16, #tpu.memory_space<vmem>>, %arg12: memref<4x8x8xbf16, #tpu.memory_space<vmem>>) attributes {dimension_semantics = [#tpu.dimension_semantics<parallel>, #tpu.dimension_semantics<arbitrary>], iteration_bounds = array<i64: 2, 1>, scalar_prefetch = 0 : i64, scratch_operands = 2 : i64, tpu.core_type = #tpu.core_type<tc>, window_params = [{transform_indices = @transform_0, window_bounds = array<i64: 1, 8, 32>}, {pipeline_mode = #tpu.pipeline_mode<synchronous>, transform_indices = @transform_1, window_bounds = array<i64: 1, 32>}, {pipeline_mode = #tpu.pipeline_mode<synchronous>, transform_indices = @transform_2, window_bounds = array<i64: 1, 32>}, {pipeline_mode = #tpu.pipeline_mode<synchronous>, transform_indices = @transform_3, window_bounds = array<i64: 32, 32>}, {pipeline_mode = #tpu.pipeline_mode<synchronous>, transform_indices = @transform_4, window_bounds = array<i64: 32, 64>}, {pipeline_mode = #tpu.pipeline_mode<synchronous>, transform_indices = @transform_5, window_bounds = array<i64: 32, 32>}, {pipeline_mode = #tpu.pipeline_mode<synchronous>, transform_indices = @transform_6, window_bounds = array<i64: 32, 128>}, {pipeline_mode = #tpu.pipeline_mode<synchronous>, transform_indices = @transform_7, window_bounds = array<i64: 64, 32>}, {transform_indices = @transform_8, window_bounds = array<i64: 1, 8, 32>}]} {
    %c0_i32 = arith.constant 0 : i32
    %0 = arith.cmpi eq, %arg1, %c0_i32 : i32
    %1 = arith.extui %0 : i1 to i32
    %c0_i32_0 = arith.constant 0 : i32
    %2 = arith.cmpi ne, %1, %c0_i32_0 : i32
    scf.if %2 {
      %c0_34 = arith.constant 0 : index
      %c0_35 = arith.constant 0 : index
      %c0_36 = arith.constant 0 : index
      %99 = vector.load %arg2[%c0_34, %c0_35, %c0_36] : memref<1x8x32xf32, #tpu.memory_space<vmem>>, vector<1x8x32xf32>
      %100 = vector.shape_cast %99 : vector<1x8x32xf32> to vector<8x32xf32>
      %c0_37 = arith.constant 0 : index
      %c0_38 = arith.constant 0 : index
      %101 = vector.load %arg3[%c0_37, %c0_38] : memref<1x32xf32, #tpu.memory_space<vmem>>, vector<1x32xf32>
      %102 = vector.shape_cast %101 : vector<1x32xf32> to vector<32xf32>
      %103 = arith.mulf %100, %100 : vector<8x32xf32>
      %cst_39 = arith.constant dense<0.000000e+00> : vector<8xf32>
      %104 = vector.multi_reduction <add>, %103, %cst_39 [1] : vector<8x32xf32> to vector<8xf32>
      %105 = vector.shape_cast %104 : vector<8xf32> to vector<8x1xf32>
      %cst_40 = arith.constant 3.200000e+01 : f32
      %106 = vector.broadcast %cst_40 : f32 to vector<8x1xf32>
      %107 = arith.divf %105, %106 : vector<8x1xf32>
      %cst_41 = arith.constant 9.99999974E-6 : f32
      %108 = vector.broadcast %cst_41 : f32 to vector<8x1xf32>
      %109 = arith.addf %107, %108 : vector<8x1xf32>
      %110 = math.rsqrt %109 : vector<8x1xf32>
      %111 = vector.broadcast %110 : vector<8x1xf32> to vector<8x32xf32>
      %112 = arith.mulf %100, %111 : vector<8x32xf32>
      %113 = vector.shape_cast %102 : vector<32xf32> to vector<1x32xf32>
      %114 = vector.broadcast %113 : vector<1x32xf32> to vector<8x32xf32>
      %115 = arith.mulf %112, %114 : vector<8x32xf32>
      %116 = arith.truncf %115 : vector<8x32xf32> to vector<8x32xbf16>
      %c0_42 = arith.constant 0 : index
      %c0_43 = arith.constant 0 : index
      %117 = vector.load %arg6[%c0_42, %c0_43] : memref<32x64xbf16, #tpu.memory_space<vmem>>, vector<32x64xbf16>
      %cst_44 = arith.constant dense<0.000000e+00> : vector<8x64xf32>
      %118 = tpu.matmul %116, %117, %cst_44 {dimension_numbers = #tpu.dot_dimension_numbers<[1], [0], [0], [1], [0, 0, 1, 1], [], []>} : vector<8x32xbf16>, vector<32x64xbf16>, vector<8x64xf32> -> vector<8x64xf32>
      %119 = vector.extract_strided_slice %118 {offsets = [0, 0], sizes = [8, 8], strides = [1, 1]} : vector<8x64xf32> to vector<8x8xf32>
      %120 = arith.truncf %119 : vector<8x8xf32> to vector<8x8xbf16>
      %c0_45 = arith.constant 0 : index
      %c0_46 = arith.constant 0 : index
      %c0_47 = arith.constant 0 : index
      %121 = vector.load %arg11[%c0_45, %c0_46, %c0_47] : memref<4x8x8xbf16, #tpu.memory_space<vmem>>, vector<1x8x8xbf16>
      %122 = vector.shape_cast %121 : vector<1x8x8xbf16> to vector<8x8xbf16>
      %123 = vector.shape_cast %120 : vector<8x8xbf16> to vector<1x8x8xbf16>
      tpu.vector_store %arg11[%c0_45, %c0_46, %c0_47], %123 {strides = array<i32>} : memref<4x8x8xbf16, #tpu.memory_space<vmem>>, vector<1x8x8xbf16>,
      %124 = vector.extract_strided_slice %118 {offsets = [0, 32], sizes = [8, 8], strides = [1, 1]} : vector<8x64xf32> to vector<8x8xf32>
      %125 = arith.truncf %124 : vector<8x8xf32> to vector<8x8xbf16>
      %c0_48 = arith.constant 0 : index
      %c0_49 = arith.constant 0 : index
      %c0_50 = arith.constant 0 : index
      %126 = vector.load %arg12[%c0_48, %c0_49, %c0_50] : memref<4x8x8xbf16, #tpu.memory_space<vmem>>, vector<1x8x8xbf16>
      %127 = vector.shape_cast %126 : vector<1x8x8xbf16> to vector<8x8xbf16>
      %128 = vector.shape_cast %125 : vector<8x8xbf16> to vector<1x8x8xbf16>
      tpu.vector_store %arg12[%c0_48, %c0_49, %c0_50], %128 {strides = array<i32>} : memref<4x8x8xbf16, #tpu.memory_space<vmem>>, vector<1x8x8xbf16>,
      %129 = vector.extract_strided_slice %118 {offsets = [0, 8], sizes = [8, 8], strides = [1, 1]} : vector<8x64xf32> to vector<8x8xf32>
      %130 = arith.truncf %129 : vector<8x8xf32> to vector<8x8xbf16>
      %c1 = arith.constant 1 : index
      %c0_51 = arith.constant 0 : index
      %c0_52 = arith.constant 0 : index
      %131 = vector.load %arg11[%c1, %c0_51, %c0_52] : memref<4x8x8xbf16, #tpu.memory_space<vmem>>, vector<1x8x8xbf16>
      %132 = vector.shape_cast %131 : vector<1x8x8xbf16> to vector<8x8xbf16>
      %133 = vector.shape_cast %130 : vector<8x8xbf16> to vector<1x8x8xbf16>
      tpu.vector_store %arg11[%c1, %c0_51, %c0_52], %133 {strides = array<i32>} : memref<4x8x8xbf16, #tpu.memory_space<vmem>>, vector<1x8x8xbf16>,
      %134 = vector.extract_strided_slice %118 {offsets = [0, 40], sizes = [8, 8], strides = [1, 1]} : vector<8x64xf32> to vector<8x8xf32>
      %135 = arith.truncf %134 : vector<8x8xf32> to vector<8x8xbf16>
      %c1_53 = arith.constant 1 : index
      %c0_54 = arith.constant 0 : index
      %c0_55 = arith.constant 0 : index
      %136 = vector.load %arg12[%c1_53, %c0_54, %c0_55] : memref<4x8x8xbf16, #tpu.memory_space<vmem>>, vector<1x8x8xbf16>
      %137 = vector.shape_cast %136 : vector<1x8x8xbf16> to vector<8x8xbf16>
      %138 = vector.shape_cast %135 : vector<8x8xbf16> to vector<1x8x8xbf16>
      tpu.vector_store %arg12[%c1_53, %c0_54, %c0_55], %138 {strides = array<i32>} : memref<4x8x8xbf16, #tpu.memory_space<vmem>>, vector<1x8x8xbf16>,
      %139 = vector.extract_strided_slice %118 {offsets = [0, 16], sizes = [8, 8], strides = [1, 1]} : vector<8x64xf32> to vector<8x8xf32>
      %140 = arith.truncf %139 : vector<8x8xf32> to vector<8x8xbf16>
      %c2 = arith.constant 2 : index
      %c0_56 = arith.constant 0 : index
      %c0_57 = arith.constant 0 : index
      %141 = vector.load %arg11[%c2, %c0_56, %c0_57] : memref<4x8x8xbf16, #tpu.memory_space<vmem>>, vector<1x8x8xbf16>
      %142 = vector.shape_cast %141 : vector<1x8x8xbf16> to vector<8x8xbf16>
      %143 = vector.shape_cast %140 : vector<8x8xbf16> to vector<1x8x8xbf16>
      tpu.vector_store %arg11[%c2, %c0_56, %c0_57], %143 {strides = array<i32>} : memref<4x8x8xbf16, #tpu.memory_space<vmem>>, vector<1x8x8xbf16>,
      %144 = vector.extract_strided_slice %118 {offsets = [0, 48], sizes = [8, 8], strides = [1, 1]} : vector<8x64xf32> to vector<8x8xf32>
      %145 = arith.truncf %144 : vector<8x8xf32> to vector<8x8xbf16>
      %c2_58 = arith.constant 2 : index
      %c0_59 = arith.constant 0 : index
      %c0_60 = arith.constant 0 : index
      %146 = vector.load %arg12[%c2_58, %c0_59, %c0_60] : memref<4x8x8xbf16, #tpu.memory_space<vmem>>, vector<1x8x8xbf16>
      %147 = vector.shape_cast %146 : vector<1x8x8xbf16> to vector<8x8xbf16>
      %148 = vector.shape_cast %145 : vector<8x8xbf16> to vector<1x8x8xbf16>
      tpu.vector_store %arg12[%c2_58, %c0_59, %c0_60], %148 {strides = array<i32>} : memref<4x8x8xbf16, #tpu.memory_space<vmem>>, vector<1x8x8xbf16>,
      %149 = vector.extract_strided_slice %118 {offsets = [0, 24], sizes = [8, 8], strides = [1, 1]} : vector<8x64xf32> to vector<8x8xf32>
      %150 = arith.truncf %149 : vector<8x8xf32> to vector<8x8xbf16>
      %c3 = arith.constant 3 : index
      %c0_61 = arith.constant 0 : index
      %c0_62 = arith.constant 0 : index
      %151 = vector.load %arg11[%c3, %c0_61, %c0_62] : memref<4x8x8xbf16, #tpu.memory_space<vmem>>, vector<1x8x8xbf16>
      %152 = vector.shape_cast %151 : vector<1x8x8xbf16> to vector<8x8xbf16>
      %153 = vector.shape_cast %150 : vector<8x8xbf16> to vector<1x8x8xbf16>
      tpu.vector_store %arg11[%c3, %c0_61, %c0_62], %153 {strides = array<i32>} : memref<4x8x8xbf16, #tpu.memory_space<vmem>>, vector<1x8x8xbf16>,
      %154 = vector.extract_strided_slice %118 {offsets = [0, 56], sizes = [8, 8], strides = [1, 1]} : vector<8x64xf32> to vector<8x8xf32>
      %155 = arith.truncf %154 : vector<8x8xf32> to vector<8x8xbf16>
      %c3_63 = arith.constant 3 : index
      %c0_64 = arith.constant 0 : index
      %c0_65 = arith.constant 0 : index
      %156 = vector.load %arg12[%c3_63, %c0_64, %c0_65] : memref<4x8x8xbf16, #tpu.memory_space<vmem>>, vector<1x8x8xbf16>
      %157 = vector.shape_cast %156 : vector<1x8x8xbf16> to vector<8x8xbf16>
      %158 = vector.shape_cast %155 : vector<8x8xbf16> to vector<1x8x8xbf16>
      tpu.vector_store %arg12[%c3_63, %c0_64, %c0_65], %158 {strides = array<i32>} : memref<4x8x8xbf16, #tpu.memory_space<vmem>>, vector<1x8x8xbf16>,
    } else {
    }
    %c8_i32 = arith.constant 8 : i32
    %3 = arith.muli %arg1, %c8_i32 : i32
    %4 = tpu.assume_multiple %3, 8 : i32
    %c0 = arith.constant 0 : index
    %5 = arith.index_cast %4 : i32 to index
    %c0_1 = arith.constant 0 : index
    %6 = vector.load %arg2[%c0, %5, %c0_1] : memref<1x8x32xf32, #tpu.memory_space<vmem>>, vector<1x8x32xf32>
    %7 = vector.shape_cast %6 : vector<1x8x32xf32> to vector<8x32xf32>
    %c0_2 = arith.constant 0 : index
    %c0_3 = arith.constant 0 : index
    %8 = vector.load %arg3[%c0_2, %c0_3] : memref<1x32xf32, #tpu.memory_space<vmem>>, vector<1x32xf32>
    %9 = vector.shape_cast %8 : vector<1x32xf32> to vector<32xf32>
    %10 = arith.mulf %7, %7 : vector<8x32xf32>
    %cst = arith.constant dense<0.000000e+00> : vector<8xf32>
    %11 = vector.multi_reduction <add>, %10, %cst [1] : vector<8x32xf32> to vector<8xf32>
    %12 = vector.shape_cast %11 : vector<8xf32> to vector<8x1xf32>
    %cst_4 = arith.constant 3.200000e+01 : f32
    %13 = vector.broadcast %cst_4 : f32 to vector<8x1xf32>
    %14 = arith.divf %12, %13 : vector<8x1xf32>
    %cst_5 = arith.constant 9.99999974E-6 : f32
    %15 = vector.broadcast %cst_5 : f32 to vector<8x1xf32>
    %16 = arith.addf %14, %15 : vector<8x1xf32>
    %17 = math.rsqrt %16 : vector<8x1xf32>
    %18 = vector.broadcast %17 : vector<8x1xf32> to vector<8x32xf32>
    %19 = arith.mulf %7, %18 : vector<8x32xf32>
    %20 = vector.shape_cast %9 : vector<32xf32> to vector<1x32xf32>
    %21 = vector.broadcast %20 : vector<1x32xf32> to vector<8x32xf32>
    %22 = arith.mulf %19, %21 : vector<8x32xf32>
    %23 = arith.truncf %22 : vector<8x32xf32> to vector<8x32xbf16>
    %c0_6 = arith.constant 0 : index
    %c0_7 = arith.constant 0 : index
    %24 = vector.load %arg5[%c0_6, %c0_7] : memref<32x32xbf16, #tpu.memory_space<vmem>>, vector<32x32xbf16>
    %cst_8 = arith.constant dense<0.000000e+00> : vector<8x32xf32>
    %25 = tpu.matmul %23, %24, %cst_8 {dimension_numbers = #tpu.dot_dimension_numbers<[1], [0], [0], [1], [0, 0, 1, 1], [], []>} : vector<8x32xbf16>, vector<32x32xbf16>, vector<8x32xf32> -> vector<8x32xf32>
    %26 = vector.extract_strided_slice %25 {offsets = [0, 0], sizes = [8, 8], strides = [1, 1]} : vector<8x32xf32> to vector<8x8xf32>
    %27 = vector.extract_strided_slice %25 {offsets = [0, 8], sizes = [8, 8], strides = [1, 1]} : vector<8x32xf32> to vector<8x8xf32>
    %28 = vector.extract_strided_slice %25 {offsets = [0, 16], sizes = [8, 8], strides = [1, 1]} : vector<8x32xf32> to vector<8x8xf32>
    %29 = vector.extract_strided_slice %25 {offsets = [0, 24], sizes = [8, 8], strides = [1, 1]} : vector<8x32xf32> to vector<8x8xf32>
    %30 = vector.shape_cast %26 : vector<8x8xf32> to vector<1x8x8xf32>
    %31 = vector.shape_cast %27 : vector<8x8xf32> to vector<1x8x8xf32>
    %32 = vector.shape_cast %28 : vector<8x8xf32> to vector<1x8x8xf32>
    %33 = vector.shape_cast %29 : vector<8x8xf32> to vector<1x8x8xf32>
    %34 = tpu.concatenate %30, %31, %32, %33 in 0 : vector<1x8x8xf32>, vector<1x8x8xf32>, vector<1x8x8xf32>, vector<1x8x8xf32> -> vector<4x8x8xf32>
    %35 = arith.truncf %34 : vector<4x8x8xf32> to vector<4x8x8xbf16>
    %36 = tpu.iota {dimensions = array<i32: 0>} : vector<8x8xi32>
    %37 = tpu.iota {dimensions = array<i32: 1>} : vector<8x8xi32>
    %38 = arith.cmpi sge, %36, %37 : vector<8x8xi32>
    %cst_9 = arith.constant 0.000000e+00 : f32
    %cst_10 = arith.constant -1.000000e+30 : f32
    %39 = vector.broadcast %cst_9 : f32 to vector<8x8xf32>
    %40 = vector.broadcast %cst_10 : f32 to vector<8x8xf32>
    %41 = arith.select %38, %39, %40 : vector<8x8xi1>, vector<8x8xf32>
    %cst_11 = arith.constant -1.000000e+30 : f32
    %42 = vector.broadcast %cst_11 : f32 to vector<4x8x1xf32>
    %cst_12 = arith.constant 0.000000e+00 : f32
    %43 = vector.broadcast %cst_12 : f32 to vector<4x8x1xf32>
    %cst_13 = arith.constant 0.000000e+00 : f32
    %44 = vector.broadcast %cst_13 : f32 to vector<4x8x8xf32>
    %c1_i32 = arith.constant 1 : i32
    %45 = arith.addi %arg1, %c1_i32 : i32
    %c0_i32_14 = arith.constant 0 : i32
    %46 = arith.subi %45, %c0_i32_14 : i32
    %47 = arith.addi %c0_i32_14, %46 : i32
    %c1_i32_15 = arith.constant 1 : i32
    %48:3 = scf.for %arg13 = %c0_i32_14 to %47 step %c1_i32_15 iter_args(%arg14 = %42, %arg15 = %43, %arg16 = %44) -> (vector<4x8x1xf32>, vector<4x8x1xf32>, vector<4x8x8xf32>)  : i32 {
      %c8_i32_34 = arith.constant 8 : i32
      %99 = arith.muli %arg13, %c8_i32_34 : i32
      %100 = tpu.assume_multiple %99, 8 : i32
      %c0_35 = arith.constant 0 : index
      %101 = arith.index_cast %100 : i32 to index
      %c0_36 = arith.constant 0 : index
      %102 = vector.load %arg11[%c0_35, %101, %c0_36] : memref<4x8x8xbf16, #tpu.memory_space<vmem>>, vector<4x8x8xbf16>
      %c0_37 = arith.constant 0 : index
      %103 = arith.index_cast %100 : i32 to index
      %c0_38 = arith.constant 0 : index
      %104 = vector.load %arg12[%c0_37, %103, %c0_38] : memref<4x8x8xbf16, #tpu.memory_space<vmem>>, vector<4x8x8xbf16>
      "tpu.trace_start"() <{level = 10 : i32, message = "hqd,hkd->hqk"}> : () -> ()
      %cst_39 = arith.constant dense<0.000000e+00> : vector<4x8x8xf32>
      %105 = tpu.matmul %35, %102, %cst_39 {dimension_numbers = #tpu.dot_dimension_numbers<[2], [2], [1], [1], [0, 0, 0, 1, 1, 1], [0], [0]>} : vector<4x8x8xbf16>, vector<4x8x8xbf16>, vector<4x8x8xf32> -> vector<4x8x8xf32>
      "tpu.trace_stop"() : () -> ()
      %106 = arith.cmpi eq, %arg13, %arg1 : i32
      %cst_40 = arith.constant 1.000000e+00 : f32
      %cst_41 = arith.constant 0.000000e+00 : f32
      %107 = arith.select %106, %cst_40, %cst_41 : f32
      %108 = vector.broadcast %107 : f32 to vector<8x8xf32>
      %109 = arith.mulf %108, %41 : vector<8x8xf32>
      %110 = vector.shape_cast %109 : vector<8x8xf32> to vector<1x8x8xf32>
      %111 = vector.broadcast %110 : vector<1x8x8xf32> to vector<4x8x8xf32>
      %112 = arith.addf %105, %111 : vector<4x8x8xf32>
      %cst_42 = arith.constant dense<0xFF800000> : vector<4x8xf32>
      %113 = vector.multi_reduction <maximumf>, %112, %cst_42 [2] : vector<4x8x8xf32> to vector<4x8xf32>
      %114 = vector.shape_cast %113 : vector<4x8xf32> to vector<4x8x1xf32>
      %115 = arith.maximumf %arg14, %114 : vector<4x8x1xf32>
      %116 = arith.subf %arg14, %115 : vector<4x8x1xf32>
      %117 = math.exp %116 : vector<4x8x1xf32>
      %118 = vector.broadcast %115 : vector<4x8x1xf32> to vector<4x8x8xf32>
      %119 = arith.subf %112, %118 : vector<4x8x8xf32>
      %120 = math.exp %119 : vector<4x8x8xf32>
      %121 = arith.mulf %117, %arg15 : vector<4x8x1xf32>
      %cst_43 = arith.constant dense<0.000000e+00> : vector<4x8xf32>
      %122 = vector.multi_reduction <add>, %120, %cst_43 [2] : vector<4x8x8xf32> to vector<4x8xf32>
      %123 = vector.shape_cast %122 : vector<4x8xf32> to vector<4x8x1xf32>
      %124 = arith.addf %121, %123 : vector<4x8x1xf32>
      %125 = vector.broadcast %117 : vector<4x8x1xf32> to vector<4x8x8xf32>
      %126 = arith.mulf %125, %arg16 : vector<4x8x8xf32>
      %127 = arith.truncf %120 : vector<4x8x8xf32> to vector<4x8x8xbf16>
      "tpu.trace_start"() <{level = 10 : i32, message = "hqk,hkd->hqd"}> : () -> ()
      %cst_44 = arith.constant dense<0.000000e+00> : vector<4x8x8xf32>
      %128 = tpu.matmul %127, %104, %cst_44 {dimension_numbers = #tpu.dot_dimension_numbers<[2], [1], [1], [2], [0, 0, 0, 1, 1, 2], [0], [0]>} : vector<4x8x8xbf16>, vector<4x8x8xbf16>, vector<4x8x8xf32> -> vector<4x8x8xf32>
      "tpu.trace_stop"() : () -> ()
      %129 = arith.addf %126, %128 : vector<4x8x8xf32>
      scf.yield %115, %124, %129 : vector<4x8x1xf32>, vector<4x8x1xf32>, vector<4x8x8xf32>
    }
    %49 = tpu.reciprocal %48#1 {approx = true} : vector<4x8x1xf32> -> vector<4x8x1xf32>
    %50 = vector.broadcast %49 : vector<4x8x1xf32> to vector<4x8x8xf32>
    %51 = arith.mulf %48#2, %50 : vector<4x8x8xf32>
    %52 = arith.truncf %51 : vector<4x8x8xf32> to vector<4x8x8xbf16>
    %53 = vector.extract_strided_slice %52 {offsets = [0, 0, 0], sizes = [1, 8, 8], strides = [1, 1, 1]} : vector<4x8x8xbf16> to vector<1x8x8xbf16>
    %54 = vector.shape_cast %53 : vector<1x8x8xbf16> to vector<8x8xbf16>
    %55 = vector.extract_strided_slice %52 {offsets = [1, 0, 0], sizes = [1, 8, 8], strides = [1, 1, 1]} : vector<4x8x8xbf16> to vector<1x8x8xbf16>
    %56 = vector.shape_cast %55 : vector<1x8x8xbf16> to vector<8x8xbf16>
    %57 = vector.extract_strided_slice %52 {offsets = [2, 0, 0], sizes = [1, 8, 8], strides = [1, 1, 1]} : vector<4x8x8xbf16> to vector<1x8x8xbf16>
    %58 = vector.shape_cast %57 : vector<1x8x8xbf16> to vector<8x8xbf16>
    %59 = vector.extract_strided_slice %52 {offsets = [3, 0, 0], sizes = [1, 8, 8], strides = [1, 1, 1]} : vector<4x8x8xbf16> to vector<1x8x8xbf16>
    %60 = vector.shape_cast %59 : vector<1x8x8xbf16> to vector<8x8xbf16>
    %61 = tpu.concatenate %54, %56, %58, %60 in 1 : vector<8x8xbf16>, vector<8x8xbf16>, vector<8x8xbf16>, vector<8x8xbf16> -> vector<8x32xbf16>
    %c0_16 = arith.constant 0 : index
    %c0_17 = arith.constant 0 : index
    %62 = vector.load %arg7[%c0_16, %c0_17] : memref<32x32xbf16, #tpu.memory_space<vmem>>, vector<32x32xbf16>
    %cst_18 = arith.constant dense<0.000000e+00> : vector<8x32xf32>
    %63 = tpu.matmul %61, %62, %cst_18 {dimension_numbers = #tpu.dot_dimension_numbers<[1], [0], [0], [1], [0, 0, 1, 1], [], []>} : vector<8x32xbf16>, vector<32x32xbf16>, vector<8x32xf32> -> vector<8x32xf32>
    %64 = arith.addf %63, %7 : vector<8x32xf32>
    %c0_19 = arith.constant 0 : index
    %c0_20 = arith.constant 0 : index
    %65 = vector.load %arg4[%c0_19, %c0_20] : memref<1x32xf32, #tpu.memory_space<vmem>>, vector<1x32xf32>
    %66 = vector.shape_cast %65 : vector<1x32xf32> to vector<32xf32>
    %67 = arith.mulf %64, %64 : vector<8x32xf32>
    %cst_21 = arith.constant dense<0.000000e+00> : vector<8xf32>
    %68 = vector.multi_reduction <add>, %67, %cst_21 [1] : vector<8x32xf32> to vector<8xf32>
    %69 = vector.shape_cast %68 : vector<8xf32> to vector<8x1xf32>
    %cst_22 = arith.constant 3.200000e+01 : f32
    %70 = vector.broadcast %cst_22 : f32 to vector<8x1xf32>
    %71 = arith.divf %69, %70 : vector<8x1xf32>
    %cst_23 = arith.constant 9.99999974E-6 : f32
    %72 = vector.broadcast %cst_23 : f32 to vector<8x1xf32>
    %73 = arith.addf %71, %72 : vector<8x1xf32>
    %74 = math.rsqrt %73 : vector<8x1xf32>
    %75 = vector.broadcast %74 : vector<8x1xf32> to vector<8x32xf32>
    %76 = arith.mulf %64, %75 : vector<8x32xf32>
    %77 = vector.shape_cast %66 : vector<32xf32> to vector<1x32xf32>
    %78 = vector.broadcast %77 : vector<1x32xf32> to vector<8x32xf32>
    %79 = arith.mulf %76, %78 : vector<8x32xf32>
    %80 = arith.truncf %79 : vector<8x32xf32> to vector<8x32xbf16>
    %c0_24 = arith.constant 0 : index
    %c0_25 = arith.constant 0 : index
    %81 = vector.load %arg8[%c0_24, %c0_25] : memref<32x128xbf16, #tpu.memory_space<vmem>>, vector<32x128xbf16>
    %cst_26 = arith.constant dense<0.000000e+00> : vector<8x128xf32>
    %82 = tpu.matmul %80, %81, %cst_26 {dimension_numbers = #tpu.dot_dimension_numbers<[1], [0], [0], [1], [0, 0, 1, 1], [], []>} : vector<8x32xbf16>, vector<32x128xbf16>, vector<8x128xf32> -> vector<8x128xf32>
    %83 = vector.extract_strided_slice %82 {offsets = [0, 0], sizes = [8, 64], strides = [1, 1]} : vector<8x128xf32> to vector<8x64xf32>
    %84 = vector.extract_strided_slice %82 {offsets = [0, 64], sizes = [8, 64], strides = [1, 1]} : vector<8x128xf32> to vector<8x64xf32>
    %85 = arith.negf %83 : vector<8x64xf32>
    %86 = math.exp %85 : vector<8x64xf32>
    %cst_27 = arith.constant 1.000000e+00 : f32
    %87 = vector.broadcast %cst_27 : f32 to vector<8x64xf32>
    %88 = arith.addf %87, %86 : vector<8x64xf32>
    %89 = arith.divf %87, %88 : vector<8x64xf32>
    %90 = arith.mulf %83, %89 : vector<8x64xf32>
    %91 = arith.mulf %90, %84 : vector<8x64xf32>
    %92 = arith.truncf %91 : vector<8x64xf32> to vector<8x64xbf16>
    %c0_28 = arith.constant 0 : index
    %c0_29 = arith.constant 0 : index
    %93 = vector.load %arg9[%c0_28, %c0_29] : memref<64x32xbf16, #tpu.memory_space<vmem>>, vector<64x32xbf16>
    %cst_30 = arith.constant dense<0.000000e+00> : vector<8x32xf32>
    %94 = tpu.matmul %92, %93, %cst_30 {dimension_numbers = #tpu.dot_dimension_numbers<[1], [0], [0], [1], [0, 0, 1, 1], [], []>} : vector<8x64xbf16>, vector<64x32xbf16>, vector<8x32xf32> -> vector<8x32xf32>
    %95 = arith.addf %94, %64 : vector<8x32xf32>
    %c0_31 = arith.constant 0 : index
    %c0_32 = arith.constant 0 : index
    %c0_33 = arith.constant 0 : index
    %96 = vector.load %arg10[%c0_31, %c0_32, %c0_33] : memref<1x8x32xf32, #tpu.memory_space<vmem>>, vector<1x8x32xf32>
    %97 = vector.shape_cast %96 : vector<1x8x32xf32> to vector<8x32xf32>
    %98 = vector.shape_cast %95 : vector<8x32xf32> to vector<1x8x32xf32>
    tpu.vector_store %arg10[%c0_31, %c0_32, %c0_33], %98 {strides = array<i32>} : memref<1x8x32xf32, #tpu.memory_space<vmem>>, vector<1x8x32xf32>,
    return
  }
  func.func @transform_0(%arg0: i32, %arg1: i32) -> (i32, i32, i32) {
    %c0_i32 = arith.constant 0 : i32
    %c0_i32_0 = arith.constant 0 : i32
    %c0_i32_1 = arith.constant 0 : i32
    return %arg0, %c0_i32, %c0_i32_0 : i32, i32, i32
  }
  func.func @transform_1(%arg0: i32, %arg1: i32) -> (i32, i32) {
    %c0_i32 = arith.constant 0 : i32
    %c0_i32_0 = arith.constant 0 : i32
    %c0_i32_1 = arith.constant 0 : i32
    return %c0_i32, %c0_i32_0 : i32, i32
  }
  func.func @transform_2(%arg0: i32, %arg1: i32) -> (i32, i32) {
    %c0_i32 = arith.constant 0 : i32
    %c0_i32_0 = arith.constant 0 : i32
    %c0_i32_1 = arith.constant 0 : i32
    return %c0_i32, %c0_i32_0 : i32, i32
  }
  func.func @transform_3(%arg0: i32, %arg1: i32) -> (i32, i32) {
    %c0_i32 = arith.constant 0 : i32
    %c0_i32_0 = arith.constant 0 : i32
    %c0_i32_1 = arith.constant 0 : i32
    return %c0_i32, %c0_i32_0 : i32, i32
  }
  func.func @transform_4(%arg0: i32, %arg1: i32) -> (i32, i32) {
    %c0_i32 = arith.constant 0 : i32
    %c0_i32_0 = arith.constant 0 : i32
    %c0_i32_1 = arith.constant 0 : i32
    return %c0_i32, %c0_i32_0 : i32, i32
  }
  func.func @transform_5(%arg0: i32, %arg1: i32) -> (i32, i32) {
    %c0_i32 = arith.constant 0 : i32
    %c0_i32_0 = arith.constant 0 : i32
    %c0_i32_1 = arith.constant 0 : i32
    return %c0_i32, %c0_i32_0 : i32, i32
  }
  func.func @transform_6(%arg0: i32, %arg1: i32) -> (i32, i32) {
    %c0_i32 = arith.constant 0 : i32
    %c0_i32_0 = arith.constant 0 : i32
    %c0_i32_1 = arith.constant 0 : i32
    return %c0_i32, %c0_i32_0 : i32, i32
  }
  func.func @transform_7(%arg0: i32, %arg1: i32) -> (i32, i32) {
    %c0_i32 = arith.constant 0 : i32
    %c0_i32_0 = arith.constant 0 : i32
    %c0_i32_1 = arith.constant 0 : i32
    return %c0_i32, %c0_i32_0 : i32, i32
  }
  func.func @transform_8(%arg0: i32, %arg1: i32) -> (i32, i32, i32) {
    %c0_i32 = arith.constant 0 : i32
    %c0_i32_0 = arith.constant 0 : i32
    return %arg0, %arg1, %c0_i32 : i32, i32, i32
  }
}

</mosaic_0001>

<bundles_post_ra>
// kernel: tpu_custom_call.1
= control target key start
LH: loop header
LB: loop body
LE: loop exit
PB: predicated region body
PF: predicated region fallthrough
CT: control target
= control target key end

     0   :  { %13 = vsyncpa [#allocation5], 0  ;;  %s2691_s0 = inlined_call_operand.vmem [shape: f32[2,8,32], index: 0, kind: input, shape index: {}]   ;;  %s2692_s1 = inlined_call_operand.vmem [shape: f32[1,32], index: 1, kind: input, shape index: {}]   ;;  %s2693_s2 = inlined_call_operand.vmem [shape: f32[1,32], index: 2, kind: input, shape index: {}]   ;;  %s2694_s3 = inlined_call_operand.vmem [shape: bf16[32,32], index: 3, kind: input, shape index: {}]   ;;  %s2695_s4 = inlined_call_operand.vmem [shape: bf16[32,64], index: 4, kind: input, shape index: {}]   ;;  %s2696_s5 = inlined_call_operand.hbm [shape: bf16[32,32], index: 5, kind: input, shape index: {}]   ;;  %s2697_s6 = inlined_call_operand.hbm [shape: bf16[32,128], index: 6, kind: input, shape index: {}]   ;;  %s2698_s7 = inlined_call_operand.vmem [shape: bf16[64,32], index: 7, kind: input, shape index: {}]   ;;  %s2699_s8 = inlined_call_operand.hbm [shape: f32[2,8,32], index: 8, kind: output, shape index: {}]  }
   0x1   :  { %14 = vsyncpa [#allocation8], 0 }
   0x2   :  { %15 = vsyncpa [#allocation6], 0 }
   0x3   :  { %17 = vsyncpa [#allocation6 + $0x1], 0  ;;  %s2189_s27 = smov 0   ;;  %s2191_s28 = smov 0  }
   0x4   :  { %s2193_s29 = smov 0   ;;  %s2195_s30 = smov 0  }
   0x5   :  { %s2197_s9 = smov 0   ;;  %s2199_s10 = smov 0  }
   0x6 LB: > { %2707 = sst [smem:[#allocation13_spill]] %s2057_s29  ;;  %s1457_s11 = sadd.s32 4294967295, %s2069_s10   ;;  %s2069_s10 = sphi %s2199_s10, %s23_s10   ;;  %s2065_s9 = sphi %s2197_s9, %s2738_s9   ;;  %s2061_s30 = sphi %s2195_s30, %s2737_s30   ;;  %s2057_s29 = sphi %s2193_s29, %s2736_s29   ;;  %s2053_s28 = sphi %s2191_s28, %s2740_s28   ;;  %s2049_s27 = sphi %s2189_s27, %s2739_s27  }
   0x7   : > { %2708 = sst [smem:[#allocation14_spill]] %s2065_s9  ;;  %s1458_s12 = sadd.s32 4294967294, %s2069_s10  }
   0x8   : > { %s35_s13 = sadd.s32 1, %s2065_s9  ;;  %s217_s14 = sadd.s32 1, %s2057_s29 }
   0x9   : > { %p37_p0 = scmp.ge.s32.totalorder %s35_s13, 2  ;;  %p227_p1 = scmp.ne.s32.totalorder %s2057_s29, %s2053_s28 }
   0xa   : > { %p228_p2 = scmp.eq.s32.totalorder %s1457_s11, 1  ;;  %p233_p3 = scmp.ne.s32.totalorder %s2053_s28, %s2049_s27 }
   0xb   : > { %s2742_s13 = smov (%p37_p0, %s35_s13), 0  ;;  %p234_p5 = scmp.eq.s32.totalorder %s1458_s12, 1 }
   0xc   : > { %2709 = sst [smem:[#allocation15_spill]] %s2742_s13  ;;  %p2229_p4 = por %p228_p2, %p227_p1 }
   0xd   : > { %s212_s16 = ssub.s32 %s2065_s9, %s2742_s13  ;;  %p1459_p6 = scmp.ge.s32.totalorder %s2069_s10, 1 }
   0xe   : > { %s2710_s15 = scalar_select %p2229_p4, 1, 0 }
   0xf   : > { %p215_p7 = scmp.eq.s32.totalorder %s212_s16, 0  ;;  %p2236_p8 = por %p234_p5, %p233_p3 }
  0x10   : > { %p241_p9 = scmp.lt.s32.totalorder %s2069_s10, 3  ;;  %p2248_p11 = scmp.eq.s32.totalorder %s1457_s11, 0 }
  0x11   : > { %s2711_s17 = scalar_select %p2236_p8, 1, 0 }
  0x12   : > { %s2242_s18 = scalar_select %p215_p7, %s2057_s29, %s217_s14  }
  0x13   : > { %p2244_p10 = pnand %p1459_p6, %p241_p9  ;;  %s2123_s21 = smov [#allocation4]  }
  0x14   : > { %2712 = sst [smem:[#allocation16_spill]] %s2242_s18  ;;  %s265_s22 = sshll.u32 %s2123_s21, 4  ;;  %s266_s22 = int_to_ptr.vmem [resolvable:$true] %s265_s22 }
  0x15   : > { %s2713_s19 = scalar_select %p2244_p10, 1, 0 }
  0x16   : > { %s2714_s20 = scalar_select %p2248_p11, 1, 0 }
  0x17   : > { %p1641_p12 = pneg %p2244_p10  ;;  %s2124_s24 = smov [#allocation7]  }
  0x18   : > { %s278_s25 = sshll.u32 %s2124_s24, 4  ;;  %s1875_s12 = scalar_lea.hbm %s2696_s5, 256  ;;  %s2260_s25 = int_to_ptr.vmem [resolvable:$true] %s278_s25 }
  0x19   : > { %p2256_p13 = pnand %p2248_p11, %p1641_p12  ;;  %p1876_p0 = scmp.ne.s32.totalorder %s2696_s5, %s1875_s12 }
  0x1a   : > { %p1882_p5 = scmp.lt.u32.totalorder %s1875_s12, %s2696_s5 }
  0x1b   : > { %p1877_p1 = pneg %p2256_p13 }
  0x1d   : > { %p1878_p2 = pnand %p1877_p1, %p1876_p0 }
  0x1f   : > { %p1879_p3 = pneg %p1878_p2 }
  0x21   : > { %p1884_p6 = pnand %p1882_p5, %p1879_p3 }
  0x23   : > { %1887 = shalt.err (!%p1884_p6)
}
  0x24   : > { %s1888_s24 = scalar_lea.vmem %s266_s22, 256  ;;  %p1896_p8 = scmp.lt.s32.totalorder %s266_s22, %s266_s22 }
  0x25   : > { %p1889_p7 = scmp.ne.s32.totalorder %s266_s22, %s1888_s24  ;;  %p1897_p4 = scmp.lt.s32.totalorder %s1888_s24, %s1888_s24 }
  0x27   : > { %p1891_p9 = pnand %p1889_p7, %p1877_p1  ;;  %p1898_p11 = por %p1897_p4, %p1896_p8 }
  0x29   : > { %p1892_p12 = pneg %p1891_p9 }
  0x2b   : > { %p1899_p10 = pnand %p1898_p11, %p1892_p12 }
  0x2d   : > { %1902 = shalt.err (!%p1899_p10)
}
  0x2e   : > { %s2125_s26 = smov 64   ;;  %s2126_s11 = smov 4  }
  0x2f   : > { %1644 = dma.hbm_to_vmem [thread:$0]  (!%p2256_p13), %s2696_s5, 256, %s266_s22, [#allocation5], %s2125_s26, %s2125_s26, %s2126_s11  }
  0x30   : > { %s1903_s21 = scalar_lea.hbm %s2697_s6, 256 }
  0x31   : > { %p1904_p0 = scmp.ne.s32.totalorder %s2697_s6, %s1903_s21  ;;  %p1910_p10 = scmp.lt.u32.totalorder %s1903_s21, %s2697_s6 }
  0x33   : > { %p1906_p4 = pnand %p1904_p0, %p1877_p1 }
  0x35   : > { %p1907_p8 = pneg %p1906_p4 }
  0x37   : > { %p1912_p11 = pnand %p1910_p10, %p1907_p8 }
  0x39   : > { %1915 = shalt.err (!%p1912_p11)
}
  0x3a   : > { %s1916_s22 = scalar_lea.vmem %s2260_s25, 256  ;;  %p1924_p6 = scmp.lt.s32.totalorder %s2260_s25, %s2260_s25 }
  0x3b   : > { %p1917_p2 = scmp.ne.s32.totalorder %s2260_s25, %s1916_s22  ;;  %p1925_p7 = scmp.lt.s32.totalorder %s1916_s22, %s1916_s22 }
  0x3d   : > { %p1919_p3 = pnand %p1917_p2, %p1877_p1  ;;  %p1926_p9 = por %p1925_p7, %p1924_p6 }
  0x3f   : > { %p1920_p5 = pneg %p1919_p3 }
  0x41   : > { %p1927_p12 = pnand %p1926_p9, %p1920_p5 }
  0x43   : > { %1930 = shalt.err (!%p1927_p12)
}
  0x44   : > { %1647 = dma.hbm_to_vmem [thread:$0]  (!%p2256_p13), %s2697_s6, 256, %s2260_s25, [#allocation8], %s2125_s26, %s2125_s26, %s2126_s11  }
  0x45   : > { %p2716_p0 = scmp.ne.s32.totalorder %s2713_s19, 0 }
  0x46   : > { %p2717_p4 = scmp.ne.s32.totalorder (!%p2716_p0), %s2714_s20, 0 }
  0x47   : > { %304 = sbr.rel (%p2716_p0) target bundleno = 2288 (0x8f0), region = 52 }
  0x4e   : > { %2036 = dma.done.wait (%p2717_p4), [#allocation5], 256  }
  0x4f   : > { %2038 = vsyncadd (%p2717_p4), [#allocation5], 4294967040 }
  0x50   : > { %2040 = dma.done.wait (%p2717_p4), [#allocation8], 256  }
  0x51   : > { %2042 = vsyncadd (%p2717_p4), [#allocation8], 4294967040  ;;  %p341_p13 = scmp.lt.s32.totalorder %s2061_s30, 1  ;;  %vm353_vm0 = vcmask 261120   ;;  %s338_s20 = sand.u32 1, %s2053_s28   ;;  %v1829_v3 = vld [vmem:[%s2695_s4] sm:$0xff]   ;;  %v564_v33 = vlaneseq }
  0x52   : > { %v1831_v4 = vld [vmem:[%s2694_s3] sm:$0xff]   ;;  %s2338_s16 = sshll.u32 %s338_s20, 3  ;;  %v2127_v5 = vmov 0.0   ;;  %v1830_v6 = vld [vmem:[%s2695_s4 + $0x8] sm:$0xff]   ;;  %vm2128_vm1 = vmmov 0   ;;  %vm430_vm2 = vcmask 60416  }
  0x53   : > { %s342_s18 = scalar_select %p341_p13, %s2061_s30, 1  ;;  %1539 = vmatprep.subr.bf16.mxu0 %v2127_v5  ;;  %1547 = vmatprep.subr.bf16.mxu1 %v2127_v5  ;;  %v1832_v7 = vld [vmem:[%s2694_s3 + $0x8] sm:$0xff]   ;;  %v1468_v15 = vld [vmem:[%s2692_s1] ss:$0 sm:$0xff]  ;;  %v565_v34 = vshrl.u32 %v564_v33, 7  ;;  %v567_v35 = vand.u32 127, %v564_v33 }
  0x54   : > { %1540 = vmatpush3.bf16.msra.mxu0 %v1829_v3  ;;  %1548 = vmatpush3.bf16.msra.mxu1 %v1831_v4  ;;  %s2130_s23 = smov 120   ;;  %s2131_s25 = smov 104   ;;  %v2134_v36 = vmov -1e+30   ;;  %v2391_v51 = vmov 0.0   ;;  %v2393_v52 = vmov 0.0  }
  0x55   : > { %s1467_s19 = sshll.u32 %s342_s18, 3  ;;  %1541 = vmatprep.subr.bf16.mxu0 %v2127_v5  ;;  %1543 = vmatprep.mubr.msk.bf16.mxu0 %vm2128_vm1, %v2127_v5  ;;  %s2133_s11 = smov 112   ;;  %vm568_vm3 = vcmp.ge.s32.totalorder %v565_v34, %v567_v35  ;;  %v2395_v53 = vmov 0.0   ;;  %v2397_v54 = vmov 0.0   ;;  %v2399_v55 = vmov 0.0  }
  0x56   : > { %s344_s26 = scalar_lea.vmem %s2691_s0, %s1467_s19  ;;  %1549 = vmatprep.subr.bf16.mxu1 %v2127_v5  ;;  %1551 = vmatprep.mubr.msk.bf16.mxu1 %vm2128_vm1, %v2127_v5  ;;  %s2129_s19 = smov 88   ;;  %v2368_v37 = vsel %vm568_vm3, 0.0, %v2134_v36  ;;  %v2401_v56 = vmov 0.0   ;;  %v2403_v57 = vmov 0.0   ;;  %v2405_v58 = vmov 0.0  }
  0x57   : > { %v2324_v0 = vld [vmem:[%s344_s26] sm:$0xff]  ;;  %s2132_s26 = smov 96   ;;  %s2135_s13 = smov 80   ;;  %v2407_v59 = vmov -1e+30  }
  0x58   : > { %v352_v1 = vmul.f32 %v2324_v0, %v2324_v0  ;;  %1542 = vmatpush3.bf16.msra.mxu0 %v1830_v6  ;;  %1550 = vmatpush3.bf16.msra.mxu1 %v1832_v7  ;;  %s2136_s12 = smov 72   ;;  %s340_s14 = scalar_lea.vmem [#allocation9], %s2338_s16  ;;  %v2409_v60 = vmov -1e+30   ;;  %v2411_v61 = vmov -1e+30  }
  0x59   : > { %v2413_v62 = vmov -1e+30   ;;  %s2415_s21 = smov 0  }
  0x5a   : > { %v354_v2 = vsel %vm353_vm0, %v352_v1, 0.0 }
  0x5b   : > { %355 = vadd.xlane.f32.xlu0 %v354_v2 }
  0x5f   : > { %476 = vadd.xlane.f32.xlu0 %v354_v2 }
  0xe8   : > { %v356_v8 = vpop.xlane.xlu0 %355 }
  0xe9   : > { %v358_v9 = vmul.f32 0.03125, %v356_v8 }
  0xeb   : > { %v359_v10 = vadd.f32 1e-05, %v358_v9 }
  0xec   : > { %v477_v11 = vpop.xlane.xlu0 %476 }
  0xed   : > { %1833 = vrsqrt.f32 %v359_v10  ;;  %v479_v12 = vmul.f32 0.03125, %v477_v11 }
  0xef   : > { %v480_v13 = vadd.f32 1e-05, %v479_v12 }
  0xf1   : > { %1835 = vrsqrt.f32 %v480_v13 }
  0xf7   : > { %v1834_v14 = vpop.eup %1833 }
  0xf8   : > { %v361_v16 = vmul.f32 %v1834_v14, %v2324_v0 }
  0xfa   : > { %v368_v17 = vmul.f32 %v1468_v15, %v361_v16 }
  0xfb   : > { %v1836_v18 = vpop.eup %1835 }
  0xfc   : > { %v369_v19 = vpack.c.bf16 %v368_v17, %v368_v17  ;;  %v482_v20 = vmul.f32 %v1836_v18, %v2324_v0 }
  0xfe   : > { %1544 = vmatmul.mubr.msk.bf16.vlgmr.msra.gmra.mrb[0].mxu0 %vm353_vm0, %v369_v19  ;;  %v489_v21 = vmul.f32 %v1468_v15, %v482_v20 }
 0x100   : > { %v490_v22 = vpack.c.bf16 %v489_v21, %v489_v21 }
 0x102   : > { %1552 = vmatmul.mubr.msk.bf16.vlgmr.msra.gmra.mrb[0].mxu1 %vm353_vm0, %v490_v22 }
 0x1d1   : > { %v423_v23 = vpop.f32.mrb[0].mxu0 }
 0x1d2   : > { %v429_v24 = vpack.c.bf16 %v423_v23, %v423_v23  ;;  %v1545_v25 = vpop.f32.mrb[1].mxu0 }
 0x1d3   : > { %v426_v26 = vpop.f32.mrb[2].mxu0 }
 0x1d4   : > { %444 = vrot.lane.b32.xlu0 %v429_v24, %s2129_s19  ;;  %v1546_v27 = vpop.f32.mrb[3].mxu0  ;;  %431 = vst.msk [vmem:[#allocation2] sm:$0xf] %vm430_vm2, %v429_v24 }
 0x1d5   : > { %v2362_v28 = vpop.f32.mrb[0].mxu1 }
 0x1d6   : > { %v560_v29 = vpack.c.bf16 %v2362_v28, %v2362_v28  ;;  %551 = vrot.lane.b32.xlu1 %v2362_v28, %s2130_s23  ;;  %v1553_v30 = vpop.f32.mrb[1].mxu1 }
 0x1d7   : > { %v547_v31 = vpop.f32.mrb[2].mxu1 }
 0x1d8   : > { %557 = vrot.lane.b32.xlu0 %v2362_v28, %s2131_s25  ;;  %v1554_v32 = vpop.f32.mrb[3].mxu1 }
 0x1da   : > { %435 = vrot.lane.b32.xlu1 %v429_v24, %s2132_s26 }
 0x1de   : > { %439 = vrot.lane.b32.xlu1 %v429_v24, %s2130_s23 }
 0x1e2   : > { %449 = vrot.lane.b32.xlu1 %v429_v24, %s2133_s11 }
 0x1e6   : > { %454 = vrot.lane.b32.xlu1 %v429_v24, %s2135_s13 }
 0x1ea   : > { %459 = vrot.lane.b32.xlu1 %v429_v24, %s2131_s25 }
 0x1ee   : > { %464 = vrot.lane.b32.xlu1 %v429_v24, %s2136_s12 }
 0x1f2   : > { %554 = vrot.lane.b32.xlu1 %v2362_v28, %s2133_s11 }
 0x246   : > { %v445_v38 = vpop.permute.xlu0 %444 }
 0x247   : > { %448 = vst.msk [vmem:[#allocation3 + $0x4] sm:$0xf] %vm430_vm2, %v445_v38 }
 0x248   : > { %v2372_v39 = vpop.permute.xlu1 %551 }
 0x249   : > { %v561_v40 = vpack.c.bf16 %v2372_v39, %v2372_v39 }
 0x24a   : > { %v2376_v41 = vpop.permute.xlu0 %557 }
 0x24b   : > { %v563_v42 = vpack.c.bf16 %v2376_v41, %v2376_v41 }
 0x24c   : > { %v436_v43 = vpop.permute.xlu1 %435 }
 0x24d   : > { %438 = vst.msk [vmem:[#allocation3] sm:$0xf] %vm430_vm2, %v436_v43 }
 0x250   : > { %v440_v44 = vpop.permute.xlu1 %439 }
 0x251   : > { %443 = vst.msk [vmem:[#allocation2 + $0x4] sm:$0xf] %vm430_vm2, %v440_v44 }
 0x254   : > { %v450_v45 = vpop.permute.xlu1 %449 }
 0x255   : > { %453 = vst.msk [vmem:[#allocation2 + $0x8] sm:$0xf] %vm430_vm2, %v450_v45 }
 0x258   : > { %v455_v46 = vpop.permute.xlu1 %454 }
 0x259   : > { %458 = vst.msk [vmem:[#allocation3 + $0x8] sm:$0xf] %vm430_vm2, %v455_v46 }
 0x25c   : > { %v460_v47 = vpop.permute.xlu1 %459 }
 0x25d   : > { %463 = vst.msk [vmem:[#allocation2 + $0xc] sm:$0xf] %vm430_vm2, %v460_v47 }
 0x260   : > { %v465_v48 = vpop.permute.xlu1 %464 }
 0x261   : > { %468 = vst.msk [vmem:[#allocation3 + $0xc] sm:$0xf] %vm430_vm2, %v465_v48 }
 0x264   : > { %v2386_v49 = vpop.permute.xlu1 %554 }
 0x265   : > { %v562_v50 = vpack.c.bf16 %v2386_v49, %v2386_v49 }
 0x266 LB: >> { %v2137_v63 = vmov 0.0   ;;  %s1477_s24 = sshll.u32 %s2121_s21, 3  ;;  %vm2138_vm4 = vmmov 0   ;;  %vm608_vm5 = vcmask 64512   ;;  %p604_p1 = scmp.eq.s32.totalorder %s2121_s21, 0  ;;  %vm864_vm6 = vcmask 1043456   ;;  %s2121_s21 = sphi %s2415_s21, %s574_s21   ;;  %v2117_v62 = vphi %v2413_v62, %v2732_v62   ;;  %v2113_v61 = vphi %v2411_v61, %v2731_v61   ;;  %v2109_v60 = vphi %v2409_v60, %v2730_v60   ;;  %v2105_v59 = vphi %v2407_v59, %v2729_v59   ;;  %v2101_v58 = vphi %v2405_v58, %v2728_v58   ;;  %v2097_v57 = vphi %v2403_v57, %v2727_v57   ;;  %v2093_v56 = vphi %v2401_v56, %v2726_v56   ;;  %v2089_v55 = vphi %v2399_v55, %v2725_v55   ;;  %v2085_v54 = vphi %v2397_v54, %v2724_v54   ;;  %v2081_v53 = vphi %v2395_v53, %v2723_v53   ;;  %v2077_v52 = vphi %v2393_v52, %v2722_v52   ;;  %v2073_v51 = vphi %v2391_v51, %v2721_v51  }
 0x267   : >> { %1555 = vmatprep.subr.bf16.mxu0 %v2137_v63  ;;  %1561 = vmatprep.subr.bf16.mxu1 %v2137_v63  ;;  %s2463_s22 = sshra.s32 %s1477_s24, 3  ;;  %s574_s21 = sadd.s32 1, %s2121_s21  }
 0x268   : >> { %1557 = vmatprep.mubr.msk.bf16.mxu0 %vm2138_vm4, %v2137_v63  ;;  %1563 = vmatprep.mubr.msk.bf16.mxu1 %vm2138_vm4, %v2137_v63  ;;  %s1478_s29 = sshll.u32 %s2463_s22, 2  ;;  %p2559_p8 = scmp.ge.s32.totalorder %s574_s21, 1 }
 0x269   : >> { %s593_s9 = scalar_lea.vmem [#allocation2], %s1478_s29  ;;  %s599_s19 = scalar_lea.vmem [#allocation3], %s1478_s29  ;;  %vm1075_vm7 = vcmask (%p2559_p8), 130048   ;;  %vm1078_vm8 = vcmask (%p2559_p8), 195584   ;;  %vm1260_vm9 = vcmask (%p2559_p8), 523264  }
 0x26a   : >> { %v594_v1 = vld [vmem:[%s593_s9] sm:$0xf]  ;;  %v595_v2 = vld [vmem:[%s593_s9 + $0x4] sm:$0xf]  ;;  %v596_v6 = vld [vmem:[%s593_s9 + $0x8] sm:$0xf] }
 0x26b   : >> { %v613_v3 = vsel %vm608_vm5, %v594_v1, 0  ;;  %v659_v4 = vsel %vm608_vm5, %v595_v2, 0  ;;  %v597_v7 = vld [vmem:[%s593_s9 + $0xc] sm:$0xf]  ;;  %v705_v8 = vsel %vm608_vm5, %v596_v6, 0  ;;  %s2139_s25 = smov (%p2559_p8), 8  }
 0x26c   : >> { %1556 = vmatpush3.bf16.xpose.msra.mxu0 %v613_v3  ;;  %1562 = vmatpush3.bf16.xpose.msra.mxu1 %v659_v4  ;;  %v751_v9 = vsel %vm608_vm5, %v597_v7, 0  ;;  %s605_s18 = scalar_select %p604_p1, 1.0, 0.0  ;;  %v600_v43 = vld [vmem:[%s599_s19] sm:$0xf] }
 0x26d   : >> { %1567 = vmatprep.subr.bf16.mxu0 %v2137_v63  ;;  %1573 = vmatprep.subr.bf16.mxu1 %v2137_v63  ;;  %v866_v44 = vsel %vm864_vm6, %v600_v43, 0  ;;  %v601_v45 = vld [vmem:[%s599_s19 + $0x4] sm:$0xf]  ;;  %v602_v47 = vld [vmem:[%s599_s19 + $0x8] sm:$0xf]  ;;  %s2140_s26 = smov (%p2559_p8), 24  }
 0x26e   : >> { %v606_v10 = vstv %s605_s18  ;;  %v912_v46 = vsel %vm864_vm6, %v601_v45, 0  ;;  %v958_v48 = vsel %vm864_vm6, %v602_v47, 0  ;;  %v603_v1 = vld [vmem:[%s599_s19 + $0xc] sm:$0xf]  ;;  %s2141_s11 = smov (%p2559_p8), 16   ;;  %p2733_p11 = scmp.ne.s32.totalorder (%p2559_p8), %s2710_s15, 0 }
 0x26f   : >> { %v607_v11 = vmul.f32 %v606_v10, %v2368_v37  ;;  %v1004_v2 = vsel %vm864_vm6, %v603_v1, 0  ;;  %s2143_s22 = smov (%p2559_p8), [#allocation9]  }
 0x270   : > { %s1935_s29 = sshll.u32 (%p2559_p8), %s2143_s22, 4  ;;  %s1936_s29 = int_to_ptr.vmem [resolvable:$false] %s1935_s29 }
 0x271   : > { %s1937_s9 = scalar_lea.vmem (%p2559_p8), %s1936_s29, 256 }
 0x273   : >> { %1558 = vmatmul.mubr.msk.bf16.vlgmr.msra.gmra.mrb[0].mxu0 %vm608_vm5, %v560_v29  ;;  %1564 = vmatmul.mubr.msk.bf16.vlgmr.msra.gmra.mrb[0].mxu1 %vm608_vm5, %v561_v40 }
 0x274   : >> { %1568 = vmatpush3.bf16.xpose.msra.mxu0 %v705_v8  ;;  %1574 = vmatpush3.bf16.xpose.msra.mxu1 %v751_v9 }
 0x275   : >> { %1569 = vmatprep.mubr.msk.bf16.mxu0 %vm2138_vm4, %v2137_v63  ;;  %1575 = vmatprep.mubr.msk.bf16.mxu1 %vm2138_vm4, %v2137_v63 }
 0x276   : >> { %1579 = vmatprep.subr.bf16.mxu0 %v2137_v63  ;;  %1585 = vmatprep.subr.bf16.mxu1 %v2137_v63 }
 0x27b   : >> { %1570 = vmatmul.mubr.msk.bf16.vlgmr.msra.gmra.mrb[4].mxu0 %vm608_vm5, %v562_v50  ;;  %1576 = vmatmul.mubr.msk.bf16.vlgmr.msra.gmra.mrb[4].mxu1 %vm608_vm5, %v563_v42 }
 0x27c   : >> { %1581 = vmatprep.mubr.msk.bf16.mxu0 %vm2138_vm4, %v2137_v63  ;;  %1587 = vmatprep.mubr.msk.bf16.mxu1 %vm2138_vm4, %v2137_v63 }
 0x27d   : >> { %1580 = vmatpush3.bf16.msra.mxu0 %v866_v44  ;;  %1586 = vmatpush3.bf16.msra.mxu1 %v912_v46 }
 0x27e   : >> { %1591 = vmatprep.subr.bf16.mxu0 %v2137_v63  ;;  %1597 = vmatprep.subr.bf16.mxu1 %v2137_v63 }
 0x346   : >> { %v649_v12 = vpop.f32.mrb[0].mxu0  ;;  %v695_v13 = vpop.f32.mrb[0].mxu1 }
 0x347   : >> { %v650_v14 = vadd.f32 %v649_v12, %v607_v11  ;;  %v1559_v15 = vpop.f32.mrb[1].mxu0  ;;  %v696_v16 = vadd.f32 %v695_v13, %v607_v11  ;;  %v1565_v17 = vpop.f32.mrb[1].mxu1 }
 0x348   : >> { %v652_v18 = vpop.f32.mrb[2].mxu0  ;;  %v698_v19 = vpop.f32.mrb[2].mxu1 }
 0x349   : >> { %v1560_v20 = vpop.f32.mrb[3].mxu0  ;;  %v793_v21 = vsel %vm608_vm5, %v650_v14, -inf  ;;  %v1566_v22 = vpop.f32.mrb[3].mxu1  ;;  %v796_v23 = vsel %vm608_vm5, %v696_v16, -inf }
 0x34a   : >> { %794 = vmax.xlane.f32.xlu0 %v793_v21 }
 0x34e   : >> { %797 = vmax.xlane.f32.xlu0 %v796_v23  ;;  %v741_v24 = vpop.f32.mrb[4].mxu0  ;;  %v787_v25 = vpop.f32.mrb[4].mxu1 }
 0x34f   : >> { %v742_v26 = vadd.f32 %v741_v24, %v607_v11  ;;  %v1571_v27 = vpop.f32.mrb[5].mxu0  ;;  %v788_v30 = vadd.f32 %v787_v25, %v607_v11  ;;  %v1577_v31 = vpop.f32.mrb[5].mxu1 }
 0x350   : >> { %v744_v32 = vpop.f32.mrb[6].mxu0  ;;  %v790_v33 = vpop.f32.mrb[6].mxu1 }
 0x351   : >> { %v1572_v34 = vpop.f32.mrb[7].mxu0  ;;  %v799_v35 = vsel %vm608_vm5, %v742_v26, -inf  ;;  %v1578_v36 = vpop.f32.mrb[7].mxu1  ;;  %v802_v38 = vsel %vm608_vm5, %v788_v30, -inf }
 0x352   : >> { %800 = vmax.xlane.f32.xlu1 %v799_v35 }
 0x356   : >> { %803 = vmax.xlane.f32.xlu1 %v802_v38 }
 0x3d7   : >> { %v795_v3 = vpop.xlane.xlu0 %794 }
 0x3d8   : >> { %v2511_v4 = vmax.f32 %v2117_v62, %v795_v3  }
 0x3da   : >> { %v809_v6 = vsub.f32 %v2117_v62, %v2511_v4  ;;  %v821_v7 = vsub.f32 %v650_v14, %v2511_v4 }
 0x3db   : >> { %v798_v8 = vpop.xlane.xlu0 %797 }
 0x3dc   : >> { %v825_v9 = vmul.f32 1.442695, %v821_v7  ;;  %v2517_v10 = vmax.f32 %v2113_v61, %v798_v8   ;;  %v813_v34 = vmul.f32 1.442695, %v809_v6 }
 0x3de   : >> { %v810_v11 = vsub.f32 %v2113_v61, %v2517_v10  ;;  %v822_v12 = vsub.f32 %v696_v16, %v2517_v10  ;;  %1837 = vpow2.f32 %v825_v9 }
 0x3df   : >> { %v801_v13 = vpop.xlane.xlu1 %800 }
 0x3e0   : >> { %v827_v15 = vmul.f32 1.442695, %v822_v12  ;;  %v2523_v17 = vmax.f32 %v2109_v60, %v801_v13   ;;  %v815_v35 = vmul.f32 1.442695, %v810_v11 }
 0x3e2   : >> { %v811_v62 = vsub.f32 %v2109_v60, %v2523_v17  ;;  %v823_v14 = vsub.f32 %v742_v26, %v2523_v17  ;;  %1839 = vpow2.f32 %v827_v15 }
 0x3e3   : >> { %v804_v18 = vpop.xlane.xlu1 %803 }
 0x3e4   : >> { %v829_v19 = vmul.f32 1.442695, %v823_v14  ;;  %v2529_v20 = vmax.f32 %v2105_v59, %v804_v18   ;;  %v817_v36 = vmul.f32 1.442695, %v811_v62 }
 0x3e6   : >> { %v812_v61 = vsub.f32 %v2105_v59, %v2529_v20  ;;  %v824_v16 = vsub.f32 %v788_v30, %v2529_v20  ;;  %1841 = vpow2.f32 %v829_v19 }
 0x3e8   : >> { %v831_v21 = vmul.f32 1.442695, %v824_v16  ;;  %v1838_v22 = vpop.eup %1837 }
 0x3e9   : >> { %v837_v23 = vsel %vm608_vm5, %v1838_v22, 0.0  ;;  %v857_v24 = vpack.c.bf16 %v1838_v22, %v1838_v22 }
 0x3ea   : >> { %1843 = vpow2.f32 %v831_v21  ;;  %838 = vadd.xlane.f32.xlu0 %v837_v23 }
 0x3eb   : >> { %1582 = vmatmul.mubr.msk.bf16.vlgmr.msra.gmra.mrb[8].mxu0 %vm608_vm5, %v857_v24  ;;  %1845 = vpow2.f32 %v813_v34 }
 0x3ec   : >> { %v1840_v60 = vpop.eup %1839  ;;  %1592 = vmatpush3.bf16.msra.mxu0 %v958_v48  ;;  %1593 = vmatprep.mubr.msk.bf16.mxu0 %vm2138_vm4, %v2137_v63  ;;  %1847 = vpow2.f32 %v815_v35 }
 0x3ed   : >> { %v840_v25 = vsel %vm608_vm5, %v1840_v60, 0.0  ;;  %v858_v59 = vpack.c.bf16 %v1840_v60, %v1840_v60  ;;  %1849 = vpow2.f32 %v817_v36  ;;  %1619 = vmatprep.subr.bf16.mxu0 (%p2559_p8), %v2127_v5 }
 0x3ee   : >> { %841 = vadd.xlane.f32.xlu1 %v840_v25 }
 0x3ef   : >> { %1588 = vmatmul.mubr.msk.bf16.vlgmr.msra.gmra.mrb[8].mxu1 %vm608_vm5, %v858_v59 }
 0x3f0   : >> { %v1842_v26 = vpop.eup %1841  ;;  %1598 = vmatpush3.bf16.msra.mxu1 %v1004_v2  ;;  %1599 = vmatprep.mubr.msk.bf16.mxu1 %vm2138_vm4, %v2137_v63  ;;  %v819_v63 = vmul.f32 1.442695, %v812_v61 }
 0x3f1   : >> { %v843_v27 = vsel %vm608_vm5, %v1842_v26, 0.0  ;;  %v859_v30 = vpack.c.bf16 %v1842_v26, %v1842_v26  ;;  %1603 = vmatprep.subr.bf16.mxu1 (%p2559_p8), %v2127_v5 }
 0x3f2   : >> { %844 = vadd.xlane.f32.xlu0 %v843_v27  ;;  %1851 = vpow2.f32 %v819_v63 }
 0x3f3   : >> { %1594 = vmatmul.mubr.msk.bf16.vlgmr.msra.gmra.mrb[12].mxu0 %vm608_vm5, %v859_v30 }
 0x3f4   : >> { %v1844_v31 = vpop.eup %1843  ;;  %1627 = vmatprep.mubr.msk.bf16.mxu0 (%p2559_p8), %vm2128_vm1, %v2127_v5 }
 0x3f5   : >> { %v846_v32 = vsel %vm608_vm5, %v1844_v31, 0.0  ;;  %v860_v33 = vpack.c.bf16 %v1844_v31, %v1844_v31  ;;  %v1846_v38 = vpop.eup %1845 }
 0x3f6   : >> { %847 = vadd.xlane.f32.xlu1 %v846_v32  ;;  %v833_v43 = vmul.f32 %v2101_v58, %v1846_v38  ;;  %v1848_v44 = vpop.eup %1847  ;;  %v853_v13 = vmul.f32 %v2085_v54, %v1846_v38 }
 0x3f7   : >> { %1600 = vmatmul.mubr.msk.bf16.vlgmr.msra.gmra.mrb[12].mxu1 %vm608_vm5, %v860_v33  ;;  %v834_v47 = vmul.f32 %v2097_v57, %v1848_v44  ;;  %v1850_v48 = vpop.eup %1849  ;;  %v854_v18 = vmul.f32 %v2081_v53, %v1848_v44 }
 0x3f8   : >> { %v835_v3 = vmul.f32 %v2093_v56, %v1850_v48  ;;  %v855_v22 = vmul.f32 %v2077_v52, %v1850_v48  ;;  %1607 = vmatprep.mubr.msk.bf16.mxu1 (%p2559_p8), %vm2128_vm1, %v2127_v5  ;;  %v1856_v48 = vld [vmem:[#allocation7 + $0x8] sm:$0xff] (%p2559_p8)  }
 0x3fc   : >> { %v1852_v6 = vpop.eup %1851 }
 0x3fd   : >> { %v836_v9 = vmul.f32 %v2089_v55, %v1852_v6  ;;  %v856_v59 = vmul.f32 %v2073_v51, %v1852_v6 }
 0x477   : >> { %v839_v45 = vpop.xlane.xlu0 %838 }
 0x478   : >> { %v2547_v58 = vadd.f32 %v839_v45, %v833_v43  }
 0x47a   : >> { %v2718_v46 = vmov %v2547_v58 }
 0x47b   : >> { %v842_v1 = vpop.xlane.xlu1 %841 }
 0x47c   : >> { %v850_v2 = vadd.f32 %v842_v1, %v834_v47   ;;  %v1855_v47 = vld [vmem:[#allocation7] sm:$0xff] (%p2559_p8)  }
 0x47e   : > { %1861 = vrcp.f32 (%p2559_p8), %v850_v2 }
 0x47f   : >> { %v845_v7 = vpop.xlane.xlu0 %844 }
 0x480   : >> { %v851_v8 = vadd.f32 %v845_v7, %v835_v3  }
 0x482   : > { %1863 = vrcp.f32 (%p2559_p8), %v851_v8 }
 0x483   : >> { %v848_v11 = vpop.xlane.xlu1 %847 }
 0x484   : >> { %v852_v12 = vadd.f32 %v848_v11, %v836_v9   ;;  %v1857_v11 = vld [vmem:[%s2698_s7] sm:$0xff] (%p2559_p8)  }
 0x485   : > { %1620 = vmatpush3.bf16.msra.mxu0 (%p2559_p8), %v1857_v11 }
 0x486   : > { %1865 = vrcp.f32 (%p2559_p8), %v852_v12  ;;  %1621 = vmatprep.subr.bf16.mxu0 (%p2559_p8), %v2127_v5 }
 0x487   : > { %1867 = vrcp.f32 (%p2559_p8), %v2718_v46 }
 0x488   : > { %v1862_v28 = vpop.eup (%p2559_p8), %1861 }
 0x48c   : > { %v1864_v29 = vpop.eup (%p2559_p8), %1863 }
 0x490   : > { %v1866_v39 = vpop.eup (%p2559_p8), %1865 }
 0x4be   : >> { %v902_v15 = vpop.f32.mrb[8].mxu0 }
 0x4bf   : >> { %v2553_v54 = vadd.f32 %v902_v15, %v853_v13   ;;  %v1583_v58 = vpop.f32.mrb[9].mxu0  ;;  %v1859_v13 = vld [vmem:[%s2698_s7 + $0x10] sm:$0xff] (%p2559_p8)   ;;  %v1860_v15 = vld [vmem:[%s2698_s7 + $0x18] sm:$0xff] (%p2559_p8)  }
 0x4c0   : >> { %v905_v62 = vpop.f32.mrb[10].mxu0  ;;  %v2728_v58 = vmov %v2718_v46 }
 0x4c1   : >> { %v2719_v14 = vmov %v2553_v54  ;;  %v1584_v57 = vpop.f32.mrb[11].mxu0  ;;  %v2732_v62 = vmov %v2511_v4 }
 0x4c2   : >> { %v948_v19 = vpop.f32.mrb[8].mxu1  ;;  %v2727_v57 = vmov %v850_v2 }
 0x4c3   : >> { %v1047_v16 = vadd.f32 %v948_v19, %v854_v18   ;;  %v1589_v56 = vpop.f32.mrb[9].mxu1 }
 0x4c4   : >> { %v951_v61 = vpop.f32.mrb[10].mxu1  ;;  %v2726_v56 = vmov %v851_v8 }
 0x4c5   : >> { %v1590_v21 = vpop.f32.mrb[11].mxu1  ;;  %v2723_v53 = vmov %v1047_v16  ;;  %v2731_v61 = vmov %v2517_v10  ;;  %v1854_v10 = vld [vmem:[#allocation4 + $0x8] sm:$0xff] (%p2559_p8)   ;;  %v1055_v37 = vmul.f32 (%p2559_p8), %v1862_v28, %v1047_v16 }
 0x4c6   : >> { %v994_v55 = vpop.f32.mrb[12].mxu0 }
 0x4c7   : >> { %v1048_v23 = vadd.f32 %v994_v55, %v855_v22   ;;  %v1595_v24 = vpop.f32.mrb[13].mxu0  ;;  %v2725_v55 = vmov %v852_v12  ;;  %576 = sbr.rel (!%p2559_p8) target bundleno = 614 (0x266), region = 116  ;;  %v1059_v41 = vpack.c.bf16 (%p2559_p8), %v1055_v37, %v1055_v37  ;;  %v1858_v12 = vld [vmem:[%s2698_s7 + $0x8] sm:$0xff] (%p2559_p8)  }
 0x4c8   : >> { %v997_v60 = vpop.f32.mrb[14].mxu0  ;;  %1622 = vmatpush3.bf16.msra.mxu0 (%p2559_p8), %v1858_v12 }
 0x4c9   : >> { %v1596_v25 = vpop.f32.mrb[15].mxu0  ;;  %v2722_v52 = vmov %v1048_v23  ;;  %v2730_v60 = vmov %v2523_v17  ;;  %v1056_v40 = vmul.f32 (%p2559_p8), %v1864_v29, %v1048_v23  ;;  %1063 = vrot.lane.b32.xlu0 (%p2559_p8), %v1059_v41, %s2139_s25  ;;  %1623 = vmatprep.subr.bf16.mxu0 (%p2559_p8), %v2127_v5  ;;  %s2142_s25 = smov (%p2559_p8), 64  }
 0x4ca   : >> { %v1040_v54 = vpop.f32.mrb[12].mxu1 }
 0x4cb   : >> { %v1049_v26 = vadd.f32 %v1040_v54, %v856_v59   ;;  %v1601_v27 = vpop.f32.mrb[13].mxu1  ;;  %v2724_v54 = vmov %v2719_v14  ;;  %v2729_v59 = vmov %v2529_v20  ;;  %v1853_v20 = vld [vmem:[#allocation4] sm:$0xff] (%p2559_p8)   ;;  %v1060_v49 = vpack.c.bf16 (%p2559_p8), %v1056_v40, %v1056_v40 }
 0x4cc   : >> { %v1043_v30 = vpop.f32.mrb[14].mxu1  ;;  %1604 = vmatpush3.bf16.msra.mxu1 (%p2559_p8), %v1853_v20  ;;  %1624 = vmatpush3.bf16.msra.mxu0 (%p2559_p8), %v1859_v13 }
 0x4cd   : >> { %v1602_v31 = vpop.f32.mrb[15].mxu1  ;;  %v2721_v51 = vmov %v1049_v26  ;;  %1605 = vmatprep.subr.bf16.mxu1 (%p2559_p8), %v2127_v5  ;;  %v1057_v42 = vmul.f32 (%p2559_p8), %v1866_v39, %v1049_v26  ;;  %1066 = vrot.lane.b32.xlu0 (%p2559_p8), %v1060_v49, %s2141_s11  ;;  %s1320_s11 = sshll.u32 (%p2559_p8), %s340_s14, 4  ;;  %s2641_s11 = int_to_ptr.vmem [resolvable:$true] %s1320_s11 }
 0x4ce   : > { %v1868_v51 = vpop.eup %1867  ;;  %1625 = vmatprep.subr.bf16.mxu0 %v2127_v5  ;;  %s1931_s24 = scalar_lea.vmem %s2641_s11, 128  ;;  %p1938_p5 = scmp.lt.s32.totalorder %s2641_s11, %s1936_s29 }
 0x4cf   : > { %v1061_v50 = vpack.c.bf16 %v1057_v42, %v1057_v42  ;;  %v1054_v52 = vmul.f32 %v1868_v51, %v2719_v14  ;;  %p1932_p10 = scmp.ne.s32.totalorder %s2641_s11, %s1931_s24  ;;  %p1939_p6 = scmp.lt.s32.totalorder %s1937_s9, %s1931_s24 }
 0x4d0   : > { %1606 = vmatpush3.bf16.msra.mxu1 %v1854_v10  ;;  %1626 = vmatpush3.bf16.msra.mxu0 %v1860_v15 }
 0x4d1   : > { %1611 = vmatprep.subr.bf16.mxu1 %v2127_v5  ;;  %1069 = vrot.lane.b32.xlu1 %v1061_v50, %s2140_s26  ;;  %v1058_v4 = vpack.c.bf16 %v1054_v52, %v1054_v52  ;;  %s1502_s26 = sshll.u32 %s2061_s30, 7  ;;  %s1306_s30 = scalar_lea.sflag [#allocation6], %s338_s20 }
 0x4d2   : > { %s2639_s21 = scalar_lea.hbm %s2699_s8, %s1502_s26  ;;  %p1933_p2 = pnand %p1932_p10, %p2733_p11 }
 0x4d3   : > { %p1940_p7 = por %p1939_p6, %p1938_p5 }
 0x4d4   : > { %p1934_p3 = pneg %p1933_p2 }
 0x4d6   : > { %p1941_p9 = pnand %p1940_p7, %p1934_p3 }
 0x53b   : > { %v1064_v53 = vpop.permute.xlu0 %1063 }
 0x53c   : > { %v1074_v32 = vsel %vm608_vm5, %v1058_v4, %v1064_v53 }
 0x53f   : > { %v1067_v33 = vpop.permute.xlu0 %1066 }
 0x540   : > { %v1077_v34 = vsel %vm1075_vm7, %v1074_v32, %v1067_v33 }
 0x543   : > { %v1070_v17 = vpop.permute.xlu1 %1069 }
 0x544   : > { %v1080_v35 = vsel %vm1078_vm8, %v1077_v34, %v1070_v17 }
 0x545   : > { %1608 = vmatmul.mubr.msk.bf16.vlgmr.msra.gmra.mrb[0].mxu1 %vm353_vm0, %v1080_v35 }
 0x546   : > { %1615 = vmatprep.mubr.msk.bf16.mxu1 %vm2128_vm1, %v2127_v5  ;;  %1612 = vmatpush3.bf16.msra.mxu1 %v1855_v47 }
 0x547   : > { %1613 = vmatprep.subr.bf16.mxu1 %v2127_v5 }
 0x54a   : > { %1614 = vmatpush3.bf16.msra.mxu1 %v1856_v48 }
 0x618   : > { %v1133_v36 = vpop.f32.mrb[0].mxu1 }
 0x619   : > { %v1134_v63 = vadd.f32 %v1133_v36, %v2324_v0  ;;  %v1609_v38 = vpop.f32.mrb[1].mxu1  ;;  %v1491_v0 = vld [vmem:[%s2693_s2] ss:$0 sm:$0xff] }
 0x61a   : > { %v1136_v43 = vpop.f32.mrb[2].mxu1 }
 0x61b   : > { %v1610_v44 = vpop.f32.mrb[3].mxu1  ;;  %v1140_v45 = vmul.f32 %v1134_v63, %v1134_v63 }
 0x61d   : > { %v1141_v46 = vsel %vm353_vm0, %v1140_v45, 0.0 }
 0x61e   : > { %1142 = vadd.xlane.f32.xlu1 %v1141_v46 }
 0x6ab   : > { %v1143_v1 = vpop.xlane.xlu1 %1142 }
 0x6ac   : > { %v1144_v2 = vmul.f32 0.03125, %v1143_v1 }
 0x6ae   : > { %v1145_v3 = vadd.f32 1e-05, %v1144_v2 }
 0x6b0   : > { %1869 = vrsqrt.f32 %v1145_v3 }
 0x6ba   : > { %v1870_v6 = vpop.eup %1869 }
 0x6bb   : > { %v1147_v7 = vmul.f32 %v1870_v6, %v1134_v63 }
 0x6bd   : > { %v1154_v8 = vmul.f32 %v1491_v0, %v1147_v7 }
 0x6bf   : > { %v1155_v9 = vpack.c.bf16 %v1154_v8, %v1154_v8 }
 0x6c1   : > { %1616 = vmatmul.mubr.msk.bf16.vlgmr.msra.gmra.mrb[4].mxu1 %vm353_vm0, %v1155_v9 }
 0x794   : > { %v1209_v14 = vpop.f32.mrb[4].mxu1 }
 0x795   : > { %1223 = vrot.lane.b32.xlu0 %v1209_v14, %s2142_s25  ;;  %v1617_v58 = vpop.f32.mrb[5].mxu1  ;;  %v1495_v18 = vmul.f32 -1.442695, %v1209_v14 }
 0x796   : > { %v1212_v62 = vpop.f32.mrb[6].mxu1 }
 0x797   : > { %v1618_v57 = vpop.f32.mrb[7].mxu1  ;;  %1871 = vpow2.f32 %v1495_v18 }
 0x7a1   : > { %v1872_v19 = vpop.eup %1871 }
 0x7a2   : > { %v1218_v16 = vadd.f32 1.0, %v1872_v19 }
 0x7a4   : > { %1873 = vrcp.f32 %v1218_v16 }
 0x7ae   : > { %v1874_v5 = vpop.eup %1873 }
 0x7af   : > { %v1221_v56 = vmul.f32 %v1874_v5, %v1209_v14 }
 0x807   : > { %v1224_v61 = vpop.permute.xlu0 %1223 }
 0x808   : > { %v1226_v21 = vmul.f32 %v1224_v61, %v1221_v56 }
 0x80a   : > { %v1227_v22 = vpack.c.bf16 %v1226_v21, %v1226_v21 }
 0x80c   : > { %1628 = vmatmul.mubr.msk.bf16.vlgmr.msra.gmra.mrb[0].mxu0 %vm1260_vm9, %v1227_v22 }
 0x8df   : > { %v1298_v55 = vpop.f32.mrb[0].mxu0 }
 0x8e0   : > { %v1299_v23 = vadd.f32 %v1298_v55, %v1134_v63  ;;  %v1629_v24 = vpop.f32.mrb[1].mxu0 }
 0x8e1   : > { %v1301_v60 = vpop.f32.mrb[2].mxu0 }
 0x8e2   : > { %1304 = vst.msk [vmem:[%s340_s14] sm:$0xff] %vm353_vm0, %v1299_v23  ;;  %v1630_v25 = vpop.f32.mrb[3].mxu0 }
 0x8e3   : > { %1944 = shalt.err (!%p1941_p9)
}
 0x8e4   : > { %s1945_s20 = scalar_lea.hbm %s2639_s21, 128  ;;  %s1949_s18 = scalar_lea.hbm %s2699_s8, 256 }
 0x8e5   : > { %p1946_p12 = scmp.ne.s32.totalorder %s2639_s21, %s1945_s20  ;;  %p1950_p13 = scmp.lt.u32.totalorder %s2639_s21, %s2699_s8 }
 0x8e6   : > { %p1951_p1 = scmp.lt.u32.totalorder %s1949_s18, %s1945_s20  ;;  %p1953_p10 = scmp.lt.u32.totalorder %s1945_s20, %s2639_s21 }
 0x8e7   : > { %p1947_p0 = pnand %p1946_p12, %p2733_p11 }
 0x8e8   : > { %p1952_p8 = por %p1951_p1, %p1950_p13 }
 0x8e9   : > { %p1948_p4 = pneg %p1947_p0 }
 0x8ea   : > { %p1954_p2 = por %p1953_p10, %p1952_p8 }
 0x8ec   : > { %p1955_p3 = pnand %p1954_p2, %p1948_p4 }
 0x8ee   : > { %1958 = shalt.err (!%p1955_p3)
}
 0x8ef   : > { %1639 = dma.vmem_to_hbm [thread:$0]  (%p2733_p11), %s2641_s11, 128, %s2639_s21, %s1306_s30  }
 0x8f0 PF: > { %p1656_p5 = scmp.ge.s32.totalorder %s2069_s10, 2  ;;  %s1332_s25 = sand.u32 1, %s2049_s27  }
 0x8f1   : > { %p2734_p6 = scmp.ne.s32.totalorder %s2711_s17, 0  ;;  %s1333_s26 = scalar_lea.sflag [#allocation6], %s1332_s25 }
 0x8f3   : > { %p1649_p7 = pnand %p1656_p5, %p2734_p6 }
 0x8f5   : > { %2044 = dma.done.wait (!%p1649_p7), %s1333_s26, 128  }
 0x8f6   : > { %2046 = vsyncadd (!%p1649_p7), %s1333_s26, 4294967168  ;;  %s23_s10 = sadd.s32 1, %s2069_s10   ;;  %s2735_s13 = sld [smem:[#allocation13_spill]] }
 0x8f7   : > { %p20_p9 = scmp.ge.s32.totalorder %s23_s10, 4   ;;  %s2736_s29 = sld [smem:[#allocation16_spill]] }
 0x8f8   : > { %s2737_s30 = sld [smem:[#allocation14_spill]]  ;;  %s2738_s9 = sld [smem:[#allocation15_spill]] }
 0x8f9   : > { %s2739_s27 = smov %s2053_s28  ;;  %22 = sbr.rel (!%p20_p9) target bundleno = 6 (0x6), region = 127 }
 0x8fc   : > { %s2740_s28 = smov %s2735_s13 }
 0x900   :  { %1338 = vsyncpa [#allocation5], 1 }
 0x901   :  { %1340 = vsyncpa [#allocation5 + $0x1], 1 }
 0x902   :  { %1341 = vsyncpa [#allocation8], 1 }
 0x903   :  { %1342 = vsyncpa [#allocation6], 1 }
 0x904   :  { %1344 = vsyncpa [#allocation6 + $0x1], 1 }

</bundles_post_ra>
